<compile_context>
chip_gen: v7x
topology: tpu7x:2x2x1
jax: 0.10.0
libtpu: 0.0.40
codegen_flags: <defaults>
</compile_context>

<pallas_src>
import functools

import jax
import jax.numpy as jnp
from jax.experimental import pallas as pl
from jax.experimental.pallas import tpu as pltpu


def _mgcl_kernel(adj_ref, x_ref, w_ref, b2_ref, wlin_ref, blin_ref, out_ref,
                 cache_ref, acache_ref, *,
                 input_dim, head_dim, mem_dim, layers, heads, n_nodes, batch_block):
    dcat = input_dim + mem_dim

    # Zero only the tail columns of the two caches (the x region is overwritten below).
    # Needed so the zero-padded-W matmul trick never multiplies NaN garbage from
    # uninitialised VMEM on the first grid step of each core; stale finite values from
    # previous heads/batches are harmless (they hit zero weight rows).
    zero_tail = jnp.zeros((n_nodes, mem_dim), jnp.float32)
    cache_ref[:, input_dim:dcat] = zero_tail
    acache_ref[:, input_dim:dcat] = zero_tail

    for bb in range(batch_block):                         # static unroll over batch block
        x = x_ref[bb]                                     # (N, input_dim) f32
        x16 = x.astype(jnp.bfloat16)
        cache_ref[:, 0:input_dim] = x                     # growing feature cache, head-reused

        proj = None                                       # accumulate heads in registers
        for h in range(heads):                            # static unroll over heads
            adj = adj_ref[h, bb]                          # (N, N) f32, values in {0, 1}
            denom = jnp.sum(adj, axis=-1, keepdims=True) + 1.0
            inv = pl.reciprocal(denom, approx=True)       # hoisted out of the layer loop
            adj16 = adj.astype(jnp.bfloat16)              # exact cast; bf16 MXU path

            # Incremental A-cache: acache[:, :w] == adj @ cache[:, :w] at all times.
            acache_ref[:, 0:input_dim] = jnp.dot(
                adj16, x16, preferred_element_type=jnp.float32)

            off = input_dim
            for l in range(layers):                       # static unroll over layers
                cur = cache_ref[...]                      # (N, dcat); stale tail x zero W rows
                acur = acache_ref[...]
                w_l = w_ref[h, l]                         # (dcat, head_dim), zero-padded rows
                # W_l(Ax) + W_l(outputs) == (Ax + outputs) @ W_l^T + 2*b_l  (bias pre-doubled)
                axw = jnp.dot(acur + cur, w_l,
                              preferred_element_type=jnp.float32) + b2_ref[h, l]
                g = jnp.maximum(axw * inv, 0.0)           # relu(AxW / denom)
                cache_ref[:, off:off + head_dim] = g
                if l + 1 < layers:                        # next layer needs adj @ g
                    acache_ref[:, off:off + head_dim] = jnp.dot(
                        adj16, g.astype(jnp.bfloat16), preferred_element_type=jnp.float32)
                off += head_dim

            # concat(output_list) == cache[:, input_dim:input_dim+mem_dim]; add residual.
            head_out = cache_ref[:, input_dim:input_dim + mem_dim] + x
            contrib = jnp.dot(head_out, wlin_ref[h],      # (N, out_pad), K = mem_dim
                              preferred_element_type=jnp.float32)
            proj = contrib if proj is None else proj + contrib

        # Single lane-dense (>=128-wide) store per batch element; bias folded in here.
        out_ref[bb] = proj + blin_ref[...]


def prepare_params(gcn_weights, gcn_biases, lin_weight, lin_bias, *,
                   input_dim, layers, heads, head_dim):
    """One-time host-side packing of the PyTorch module's parameters.

    gcn_weights[i*layers + j]: (head_dim, input_dim + head_dim*j)   (nn.Linear.weight)
    gcn_biases [i*layers + j]: (head_dim,)
    lin_weight: (mem_dim, mem_dim*heads), lin_bias: (mem_dim,)
    """
    mem_dim = head_dim * layers
    dcat = input_dim + mem_dim
    out_pad = ((mem_dim + 127) // 128) * 128

    w_pack = jnp.zeros((heads, layers, dcat, head_dim), jnp.float32)
    b2_pack = jnp.zeros((heads, layers, 1, head_dim), jnp.float32)
    for h in range(heads):
        for l in range(layers):
            din = input_dim + head_dim * l
            idx = h * layers + l
            w_pack = w_pack.at[h, l, :din, :].set(
                jnp.asarray(gcn_weights[idx], jnp.float32).T)
            b2_pack = b2_pack.at[h, l, 0, :].set(
                2.0 * jnp.asarray(gcn_biases[idx], jnp.float32))   # bias pre-doubled

    wlin_t = jnp.asarray(lin_weight, jnp.float32).T.reshape(heads, mem_dim, mem_dim)
    wlin_pack = jnp.zeros((heads, mem_dim, out_pad), jnp.float32)
    wlin_pack = wlin_pack.at[:, :, :mem_dim].set(wlin_t)
    blin_pack = jnp.zeros((1, out_pad), jnp.float32)
    blin_pack = blin_pack.at[0, :mem_dim].set(jnp.asarray(lin_bias, jnp.float32))
    return w_pack, b2_pack, wlin_pack, blin_pack


def multi_graph_conv_layer(adj, x, w_pack, b2_pack, wlin_pack, blin_pack, *,
                           layers, heads, head_dim, batch_block=1):
    """adj: (heads, B, N, N) 0/1 float; x: (B, N, input_dim). Returns (B, N, mem_dim)."""
    heads_a, B, N, _ = adj.shape
    assert heads_a == heads
    input_dim = x.shape[-1]
    mem_dim = head_dim * layers
    assert input_dim == mem_dim, "residual connection requires input_dim == output_dim"
    dcat = input_dim + mem_dim
    out_pad = wlin_pack.shape[-1]
    bt = batch_block
    assert B % bt == 0, "batch_block must divide the batch size"

    kern = functools.partial(
        _mgcl_kernel, input_dim=input_dim, head_dim=head_dim, mem_dim=mem_dim,
        layers=layers, heads=heads, n_nodes=N, batch_block=bt)

    out = pl.pallas_call(
        kern,
        out_shape=jax.ShapeDtypeStruct((B, N, out_pad), jnp.float32),
        grid_spec=pltpu.PrefetchScalarGridSpec(
            num_scalar_prefetch=0,
            grid=(B // bt,),                               # heads folded into the body
            in_specs=[
                pl.BlockSpec((heads, bt, N, N), lambda b: (0, b, 0, 0)),
                pl.BlockSpec((bt, N, input_dim), lambda b: (b, 0, 0)),
                pl.BlockSpec((heads, layers, dcat, head_dim), lambda b: (0, 0, 0, 0)),
                pl.BlockSpec((heads, layers, 1, head_dim), lambda b: (0, 0, 0, 0)),
                pl.BlockSpec((heads, mem_dim, out_pad), lambda b: (0, 0, 0)),
                pl.BlockSpec((1, out_pad), lambda b: (0, 0)),
            ],
            out_specs=pl.BlockSpec((bt, N, out_pad), lambda b: (b, 0, 0)),
            scratch_shapes=[pltpu.VMEM((N, dcat), jnp.float32),   # feature cache
                            pltpu.VMEM((N, dcat), jnp.float32)],  # adj @ cache ("A-cache")
        ),
        compiler_params=pltpu.CompilerParams(
            dimension_semantics=("parallel",),
            vmem_limit_bytes=32 * 1024 * 1024),
    )(adj, x, w_pack, b2_pack, wlin_pack, blin_pack)
    return out[:, :, :mem_dim]                             # drop lane padding


def reference(adj, x, gcn_weights, gcn_biases, lin_weight, lin_bias, *,
              layers, heads, head_dim):
    """Pure-JAX transcription of the PyTorch forward (eval mode, dropout off)."""
    multi = []
    for h in range(heads):
        a = adj[h]                                         # (B, N, N)
        denom = a.sum(axis=2, keepdims=True) + 1.0
        outputs = x
        cache = [outputs]
        outs = []
        for l in range(layers):
            W = gcn_weights[h * layers + l]                # (head_dim, din)
            b = gcn_biases[h * layers + l]                 # (head_dim,)
            Ax = jnp.einsum('bij,bjd->bid', a, outputs)
            AxW = (Ax @ W.T + b) + (outputs @ W.T + b)
            AxW = AxW / denom
            g = jax.nn.relu(AxW)
            cache.append(g)
            outputs = jnp.concatenate(cache, axis=2)
            outs.append(g)
        multi.append(jnp.concatenate(outs, axis=2) + x)
    final = jnp.concatenate(multi, axis=2)
    return final @ lin_weight.T + lin_bias


if __name__ == "__main__":
    # Small shapes consistent with the module: residual requires input_dim == mem_dim.
    B, N = 2, 8
    heads, layers = 2, 2
    mem_dim = 32
    head_dim = mem_dim // layers          # 16
    input_dim = mem_dim                   # 32

    key = jax.random.PRNGKey(0)
    k_adj, k_x, k_w, k_b, k_lw, k_lb = jax.random.split(key, 6)

    adj = (jax.random.uniform(k_adj, (heads, B, N, N)) > 0.5).astype(jnp.float32)
    x = jax.random.normal(k_x, (B, N, input_dim), dtype=jnp.float32)

    # Per-(head, layer) GCN weights in PyTorch nn.Linear layout (out_features, in_features).
    wkeys = jax.random.split(k_w, heads * layers)
    bkeys = jax.random.split(k_b, heads * layers)
    gcn_w, gcn_b = [], []
    for h in range(heads):
        for l in range(layers):
            din = input_dim + head_dim * l
            idx = h * layers + l
            gcn_w.append(0.1 * jax.random.normal(wkeys[idx], (head_dim, din), jnp.float32))
            gcn_b.append(0.1 * jax.random.normal(bkeys[idx], (head_dim,), jnp.float32))
    lin_w = 0.1 * jax.random.normal(k_lw, (mem_dim, heads * mem_dim), jnp.float32)
    lin_b = 0.1 * jax.random.normal(k_lb, (mem_dim,), jnp.float32)

    params = prepare_params(gcn_w, gcn_b, lin_w, lin_b, input_dim=input_dim,
                            layers=layers, heads=heads, head_dim=head_dim)

    # batch_block=1 keeps the grid at 2 "parallel" steps (megacore-friendly on v7x);
    # raise it for larger batches to amortise per-step overhead.
    out = multi_graph_conv_layer(adj, x, *params, layers=layers, heads=heads,
                                 head_dim=head_dim, batch_block=1)
    out = jax.block_until_ready(out)

    ref = reference(adj, x, gcn_w, gcn_b, lin_w, lin_b,
                    layers=layers, heads=heads, head_dim=head_dim)
    assert out.shape == (B, N, mem_dim)
    err = float(jnp.max(jnp.abs(out - ref)))
    # Tolerance accounts for the bf16 adjacency contraction + approximate reciprocal
    # (adjacency values themselves are exact in bf16); observed error is ~1e-3.
    assert jnp.allclose(out, ref, rtol=2e-2, atol=2e-2), f"max abs err {err}"
    print("KERNEL_OK")
</pallas_src>

<mosaic_0001>
module attributes {stable_mosaic.version = 11 : i64} {
  func.func @_mgcl_kernel(%arg0: i32, %arg1: memref<2x1x8x8xf32, #tpu.memory_space<vmem>>, %arg2: memref<1x8x32xf32, #tpu.memory_space<vmem>>, %arg3: memref<2x2x64x16xf32, #tpu.memory_space<vmem>>, %arg4: memref<2x2x1x16xf32, #tpu.memory_space<vmem>>, %arg5: memref<2x32x128xf32, #tpu.memory_space<vmem>>, %arg6: memref<1x128xf32, #tpu.memory_space<vmem>>, %arg7: memref<1x8x128xf32, #tpu.memory_space<vmem>>, %arg8: memref<8x64xf32, #tpu.memory_space<vmem>>, %arg9: memref<8x64xf32, #tpu.memory_space<vmem>>) attributes {dimension_semantics = [#tpu.dimension_semantics<parallel>], iteration_bounds = array<i64: 2>, scalar_prefetch = 0 : i64, scratch_operands = 2 : i64, tpu.core_type = #tpu.core_type<tc>, window_params = [{transform_indices = @transform_0, window_bounds = array<i64: 2, 1, 8, 8>}, {transform_indices = @transform_1, window_bounds = array<i64: 1, 8, 32>}, {pipeline_mode = #tpu.pipeline_mode<synchronous>, transform_indices = @transform_2, window_bounds = array<i64: 2, 2, 64, 16>}, {pipeline_mode = #tpu.pipeline_mode<synchronous>, transform_indices = @transform_3, window_bounds = array<i64: 2, 2, 1, 16>}, {pipeline_mode = #tpu.pipeline_mode<synchronous>, transform_indices = @transform_4, window_bounds = array<i64: 2, 32, 128>}, {pipeline_mode = #tpu.pipeline_mode<synchronous>, transform_indices = @transform_5, window_bounds = array<i64: 1, 128>}, {transform_indices = @transform_6, window_bounds = array<i64: 1, 8, 128>}]} {
    %cst = arith.constant 0.000000e+00 : f32
    %0 = vector.broadcast %cst : f32 to vector<8x32xf32>
    %c0 = arith.constant 0 : index
    %c32 = arith.constant 32 : index
    %1 = vector.load %arg8[%c0, %c32] : memref<8x64xf32, #tpu.memory_space<vmem>>, vector<8x32xf32>
    tpu.vector_store %arg8[%c0, %c32], %0 {strides = array<i32>} : memref<8x64xf32, #tpu.memory_space<vmem>>, vector<8x32xf32>,
    %c0_0 = arith.constant 0 : index
    %c32_1 = arith.constant 32 : index
    %2 = vector.load %arg9[%c0_0, %c32_1] : memref<8x64xf32, #tpu.memory_space<vmem>>, vector<8x32xf32>
    tpu.vector_store %arg9[%c0_0, %c32_1], %0 {strides = array<i32>} : memref<8x64xf32, #tpu.memory_space<vmem>>, vector<8x32xf32>,
    %c0_2 = arith.constant 0 : index
    %c0_3 = arith.constant 0 : index
    %c0_4 = arith.constant 0 : index
    %3 = vector.load %arg2[%c0_2, %c0_3, %c0_4] : memref<1x8x32xf32, #tpu.memory_space<vmem>>, vector<1x8x32xf32>
    %4 = vector.shape_cast %3 : vector<1x8x32xf32> to vector<8x32xf32>
    %5 = arith.truncf %4 : vector<8x32xf32> to vector<8x32xbf16>
    %c0_5 = arith.constant 0 : index
    %c0_6 = arith.constant 0 : index
    %6 = vector.load %arg8[%c0_5, %c0_6] : memref<8x64xf32, #tpu.memory_space<vmem>>, vector<8x32xf32>
    tpu.vector_store %arg8[%c0_5, %c0_6], %4 {strides = array<i32>} : memref<8x64xf32, #tpu.memory_space<vmem>>, vector<8x32xf32>,
    %c0_7 = arith.constant 0 : index
    %c0_8 = arith.constant 0 : index
    %c0_9 = arith.constant 0 : index
    %c0_10 = arith.constant 0 : index
    %7 = vector.load %arg1[%c0_7, %c0_8, %c0_9, %c0_10] : memref<2x1x8x8xf32, #tpu.memory_space<vmem>>, vector<1x1x8x8xf32>
    %8 = vector.shape_cast %7 : vector<1x1x8x8xf32> to vector<8x8xf32>
    %cst_11 = arith.constant dense<0.000000e+00> : vector<8xf32>
    %9 = vector.multi_reduction <add>, %8, %cst_11 [1] : vector<8x8xf32> to vector<8xf32>
    %10 = vector.shape_cast %9 : vector<8xf32> to vector<8x1xf32>
    %cst_12 = arith.constant 1.000000e+00 : f32
    %11 = vector.broadcast %cst_12 : f32 to vector<8x1xf32>
    %12 = arith.addf %10, %11 : vector<8x1xf32>
    %13 = tpu.reciprocal %12 {approx = true} : vector<8x1xf32> -> vector<8x1xf32>
    %14 = arith.truncf %8 : vector<8x8xf32> to vector<8x8xbf16>
    %cst_13 = arith.constant dense<0.000000e+00> : vector<8x32xf32>
    %15 = tpu.matmul %14, %5, %cst_13 {dimension_numbers = #tpu.dot_dimension_numbers<[1], [0], [0], [1], [0, 0, 1, 1], [], []>} : vector<8x8xbf16>, vector<8x32xbf16>, vector<8x32xf32> -> vector<8x32xf32>
    %c0_14 = arith.constant 0 : index
    %c0_15 = arith.constant 0 : index
    %16 = vector.load %arg9[%c0_14, %c0_15] : memref<8x64xf32, #tpu.memory_space<vmem>>, vector<8x32xf32>
    tpu.vector_store %arg9[%c0_14, %c0_15], %15 {strides = array<i32>} : memref<8x64xf32, #tpu.memory_space<vmem>>, vector<8x32xf32>,
    %c0_16 = arith.constant 0 : index
    %c0_17 = arith.constant 0 : index
    %17 = vector.load %arg8[%c0_16, %c0_17] : memref<8x64xf32, #tpu.memory_space<vmem>>, vector<8x64xf32>
    %c0_18 = arith.constant 0 : index
    %c0_19 = arith.constant 0 : index
    %18 = vector.load %arg9[%c0_18, %c0_19] : memref<8x64xf32, #tpu.memory_space<vmem>>, vector<8x64xf32>
    %c0_20 = arith.constant 0 : index
    %c0_21 = arith.constant 0 : index
    %c0_22 = arith.constant 0 : index
    %c0_23 = arith.constant 0 : index
    %19 = vector.load %arg3[%c0_20, %c0_21, %c0_22, %c0_23] : memref<2x2x64x16xf32, #tpu.memory_space<vmem>>, vector<1x1x64x16xf32>
    %20 = vector.shape_cast %19 : vector<1x1x64x16xf32> to vector<64x16xf32>
    %21 = arith.addf %18, %17 : vector<8x64xf32>
    %cst_24 = arith.constant dense<0.000000e+00> : vector<8x16xf32>
    %22 = tpu.matmul %21, %20, %cst_24 {dimension_numbers = #tpu.dot_dimension_numbers<[1], [0], [0], [1], [0, 0, 1, 1], [], []>} : vector<8x64xf32>, vector<64x16xf32>, vector<8x16xf32> -> vector<8x16xf32>
    %c0_25 = arith.constant 0 : index
    %c0_26 = arith.constant 0 : index
    %c0_27 = arith.constant 0 : index
    %c0_28 = arith.constant 0 : index
    %23 = vector.load %arg4[%c0_25, %c0_26, %c0_27, %c0_28] : memref<2x2x1x16xf32, #tpu.memory_space<vmem>>, vector<1x1x1x16xf32>
    %24 = vector.shape_cast %23 : vector<1x1x1x16xf32> to vector<1x16xf32>
    %25 = vector.broadcast %24 : vector<1x16xf32> to vector<8x16xf32>
    %26 = arith.addf %22, %25 : vector<8x16xf32>
    %27 = vector.broadcast %13 : vector<8x1xf32> to vector<8x16xf32>
    %28 = arith.mulf %26, %27 : vector<8x16xf32>
    %cst_29 = arith.constant 0.000000e+00 : f32
    %29 = vector.broadcast %cst_29 : f32 to vector<8x16xf32>
    %30 = arith.maximumf %28, %29 : vector<8x16xf32>
    %c0_30 = arith.constant 0 : index
    %c32_31 = arith.constant 32 : index
    %31 = vector.load %arg8[%c0_30, %c32_31] : memref<8x64xf32, #tpu.memory_space<vmem>>, vector<8x16xf32>
    tpu.vector_store %arg8[%c0_30, %c32_31], %30 {strides = array<i32>} : memref<8x64xf32, #tpu.memory_space<vmem>>, vector<8x16xf32>,
    %32 = arith.truncf %30 : vector<8x16xf32> to vector<8x16xbf16>
    %cst_32 = arith.constant dense<0.000000e+00> : vector<8x16xf32>
    %33 = tpu.matmul %14, %32, %cst_32 {dimension_numbers = #tpu.dot_dimension_numbers<[1], [0], [0], [1], [0, 0, 1, 1], [], []>} : vector<8x8xbf16>, vector<8x16xbf16>, vector<8x16xf32> -> vector<8x16xf32>
    %c0_33 = arith.constant 0 : index
    %c32_34 = arith.constant 32 : index
    %34 = vector.load %arg9[%c0_33, %c32_34] : memref<8x64xf32, #tpu.memory_space<vmem>>, vector<8x16xf32>
    tpu.vector_store %arg9[%c0_33, %c32_34], %33 {strides = array<i32>} : memref<8x64xf32, #tpu.memory_space<vmem>>, vector<8x16xf32>,
    %c0_35 = arith.constant 0 : index
    %c0_36 = arith.constant 0 : index
    %35 = vector.load %arg8[%c0_35, %c0_36] : memref<8x64xf32, #tpu.memory_space<vmem>>, vector<8x64xf32>
    %c0_37 = arith.constant 0 : index
    %c0_38 = arith.constant 0 : index
    %36 = vector.load %arg9[%c0_37, %c0_38] : memref<8x64xf32, #tpu.memory_space<vmem>>, vector<8x64xf32>
    %c0_39 = arith.constant 0 : index
    %c1 = arith.constant 1 : index
    %c0_40 = arith.constant 0 : index
    %c0_41 = arith.constant 0 : index
    %37 = vector.load %arg3[%c0_39, %c1, %c0_40, %c0_41] : memref<2x2x64x16xf32, #tpu.memory_space<vmem>>, vector<1x1x64x16xf32>
    %38 = vector.shape_cast %37 : vector<1x1x64x16xf32> to vector<64x16xf32>
    %39 = arith.addf %36, %35 : vector<8x64xf32>
    %cst_42 = arith.constant dense<0.000000e+00> : vector<8x16xf32>
    %40 = tpu.matmul %39, %38, %cst_42 {dimension_numbers = #tpu.dot_dimension_numbers<[1], [0], [0], [1], [0, 0, 1, 1], [], []>} : vector<8x64xf32>, vector<64x16xf32>, vector<8x16xf32> -> vector<8x16xf32>
    %c0_43 = arith.constant 0 : index
    %c1_44 = arith.constant 1 : index
    %c0_45 = arith.constant 0 : index
    %c0_46 = arith.constant 0 : index
    %41 = vector.load %arg4[%c0_43, %c1_44, %c0_45, %c0_46] : memref<2x2x1x16xf32, #tpu.memory_space<vmem>>, vector<1x1x1x16xf32>
    %42 = vector.shape_cast %41 : vector<1x1x1x16xf32> to vector<1x16xf32>
    %43 = vector.broadcast %42 : vector<1x16xf32> to vector<8x16xf32>
    %44 = arith.addf %40, %43 : vector<8x16xf32>
    %45 = vector.broadcast %13 : vector<8x1xf32> to vector<8x16xf32>
    %46 = arith.mulf %44, %45 : vector<8x16xf32>
    %cst_47 = arith.constant 0.000000e+00 : f32
    %47 = vector.broadcast %cst_47 : f32 to vector<8x16xf32>
    %48 = arith.maximumf %46, %47 : vector<8x16xf32>
    %c0_48 = arith.constant 0 : index
    %c48 = arith.constant 48 : index
    %49 = vector.load %arg8[%c0_48, %c48] : memref<8x64xf32, #tpu.memory_space<vmem>>, vector<8x16xf32>
    tpu.vector_store %arg8[%c0_48, %c48], %48 {strides = array<i32>} : memref<8x64xf32, #tpu.memory_space<vmem>>, vector<8x16xf32>,
    %c0_49 = arith.constant 0 : index
    %c32_50 = arith.constant 32 : index
    %50 = vector.load %arg8[%c0_49, %c32_50] : memref<8x64xf32, #tpu.memory_space<vmem>>, vector<8x32xf32>
    %51 = arith.addf %50, %4 : vector<8x32xf32>
    %c0_51 = arith.constant 0 : index
    %c0_52 = arith.constant 0 : index
    %c0_53 = arith.constant 0 : index
    %52 = vector.load %arg5[%c0_51, %c0_52, %c0_53] : memref<2x32x128xf32, #tpu.memory_space<vmem>>, vector<1x32x128xf32>
    %53 = vector.shape_cast %52 : vector<1x32x128xf32> to vector<32x128xf32>
    %cst_54 = arith.constant dense<0.000000e+00> : vector<8x128xf32>
    %54 = tpu.matmul %51, %53, %cst_54 {dimension_numbers = #tpu.dot_dimension_numbers<[1], [0], [0], [1], [0, 0, 1, 1], [], []>} : vector<8x32xf32>, vector<32x128xf32>, vector<8x128xf32> -> vector<8x128xf32>
    %c1_55 = arith.constant 1 : index
    %c0_56 = arith.constant 0 : index
    %c0_57 = arith.constant 0 : index
    %c0_58 = arith.constant 0 : index
    %55 = vector.load %arg1[%c1_55, %c0_56, %c0_57, %c0_58] : memref<2x1x8x8xf32, #tpu.memory_space<vmem>>, vector<1x1x8x8xf32>
    %56 = vector.shape_cast %55 : vector<1x1x8x8xf32> to vector<8x8xf32>
    %cst_59 = arith.constant dense<0.000000e+00> : vector<8xf32>
    %57 = vector.multi_reduction <add>, %56, %cst_59 [1] : vector<8x8xf32> to vector<8xf32>
    %58 = vector.shape_cast %57 : vector<8xf32> to vector<8x1xf32>
    %cst_60 = arith.constant 1.000000e+00 : f32
    %59 = vector.broadcast %cst_60 : f32 to vector<8x1xf32>
    %60 = arith.addf %58, %59 : vector<8x1xf32>
    %61 = tpu.reciprocal %60 {approx = true} : vector<8x1xf32> -> vector<8x1xf32>
    %62 = arith.truncf %56 : vector<8x8xf32> to vector<8x8xbf16>
    %cst_61 = arith.constant dense<0.000000e+00> : vector<8x32xf32>
    %63 = tpu.matmul %62, %5, %cst_61 {dimension_numbers = #tpu.dot_dimension_numbers<[1], [0], [0], [1], [0, 0, 1, 1], [], []>} : vector<8x8xbf16>, vector<8x32xbf16>, vector<8x32xf32> -> vector<8x32xf32>
    %c0_62 = arith.constant 0 : index
    %c0_63 = arith.constant 0 : index
    %64 = vector.load %arg9[%c0_62, %c0_63] : memref<8x64xf32, #tpu.memory_space<vmem>>, vector<8x32xf32>
    tpu.vector_store %arg9[%c0_62, %c0_63], %63 {strides = array<i32>} : memref<8x64xf32, #tpu.memory_space<vmem>>, vector<8x32xf32>,
    %c0_64 = arith.constant 0 : index
    %c0_65 = arith.constant 0 : index
    %65 = vector.load %arg8[%c0_64, %c0_65] : memref<8x64xf32, #tpu.memory_space<vmem>>, vector<8x64xf32>
    %c0_66 = arith.constant 0 : index
    %c0_67 = arith.constant 0 : index
    %66 = vector.load %arg9[%c0_66, %c0_67] : memref<8x64xf32, #tpu.memory_space<vmem>>, vector<8x64xf32>
    %c1_68 = arith.constant 1 : index
    %c0_69 = arith.constant 0 : index
    %c0_70 = arith.constant 0 : index
    %c0_71 = arith.constant 0 : index
    %67 = vector.load %arg3[%c1_68, %c0_69, %c0_70, %c0_71] : memref<2x2x64x16xf32, #tpu.memory_space<vmem>>, vector<1x1x64x16xf32>
    %68 = vector.shape_cast %67 : vector<1x1x64x16xf32> to vector<64x16xf32>
    %69 = arith.addf %66, %65 : vector<8x64xf32>
    %cst_72 = arith.constant dense<0.000000e+00> : vector<8x16xf32>
    %70 = tpu.matmul %69, %68, %cst_72 {dimension_numbers = #tpu.dot_dimension_numbers<[1], [0], [0], [1], [0, 0, 1, 1], [], []>} : vector<8x64xf32>, vector<64x16xf32>, vector<8x16xf32> -> vector<8x16xf32>
    %c1_73 = arith.constant 1 : index
    %c0_74 = arith.constant 0 : index
    %c0_75 = arith.constant 0 : index
    %c0_76 = arith.constant 0 : index
    %71 = vector.load %arg4[%c1_73, %c0_74, %c0_75, %c0_76] : memref<2x2x1x16xf32, #tpu.memory_space<vmem>>, vector<1x1x1x16xf32>
    %72 = vector.shape_cast %71 : vector<1x1x1x16xf32> to vector<1x16xf32>
    %73 = vector.broadcast %72 : vector<1x16xf32> to vector<8x16xf32>
    %74 = arith.addf %70, %73 : vector<8x16xf32>
    %75 = vector.broadcast %61 : vector<8x1xf32> to vector<8x16xf32>
    %76 = arith.mulf %74, %75 : vector<8x16xf32>
    %cst_77 = arith.constant 0.000000e+00 : f32
    %77 = vector.broadcast %cst_77 : f32 to vector<8x16xf32>
    %78 = arith.maximumf %76, %77 : vector<8x16xf32>
    %c0_78 = arith.constant 0 : index
    %c32_79 = arith.constant 32 : index
    %79 = vector.load %arg8[%c0_78, %c32_79] : memref<8x64xf32, #tpu.memory_space<vmem>>, vector<8x16xf32>
    tpu.vector_store %arg8[%c0_78, %c32_79], %78 {strides = array<i32>} : memref<8x64xf32, #tpu.memory_space<vmem>>, vector<8x16xf32>,
    %80 = arith.truncf %78 : vector<8x16xf32> to vector<8x16xbf16>
    %cst_80 = arith.constant dense<0.000000e+00> : vector<8x16xf32>
    %81 = tpu.matmul %62, %80, %cst_80 {dimension_numbers = #tpu.dot_dimension_numbers<[1], [0], [0], [1], [0, 0, 1, 1], [], []>} : vector<8x8xbf16>, vector<8x16xbf16>, vector<8x16xf32> -> vector<8x16xf32>
    %c0_81 = arith.constant 0 : index
    %c32_82 = arith.constant 32 : index
    %82 = vector.load %arg9[%c0_81, %c32_82] : memref<8x64xf32, #tpu.memory_space<vmem>>, vector<8x16xf32>
    tpu.vector_store %arg9[%c0_81, %c32_82], %81 {strides = array<i32>} : memref<8x64xf32, #tpu.memory_space<vmem>>, vector<8x16xf32>,
    %c0_83 = arith.constant 0 : index
    %c0_84 = arith.constant 0 : index
    %83 = vector.load %arg8[%c0_83, %c0_84] : memref<8x64xf32, #tpu.memory_space<vmem>>, vector<8x64xf32>
    %c0_85 = arith.constant 0 : index
    %c0_86 = arith.constant 0 : index
    %84 = vector.load %arg9[%c0_85, %c0_86] : memref<8x64xf32, #tpu.memory_space<vmem>>, vector<8x64xf32>
    %c1_87 = arith.constant 1 : index
    %c1_88 = arith.constant 1 : index
    %c0_89 = arith.constant 0 : index
    %c0_90 = arith.constant 0 : index
    %85 = vector.load %arg3[%c1_87, %c1_88, %c0_89, %c0_90] : memref<2x2x64x16xf32, #tpu.memory_space<vmem>>, vector<1x1x64x16xf32>
    %86 = vector.shape_cast %85 : vector<1x1x64x16xf32> to vector<64x16xf32>
    %87 = arith.addf %84, %83 : vector<8x64xf32>
    %cst_91 = arith.constant dense<0.000000e+00> : vector<8x16xf32>
    %88 = tpu.matmul %87, %86, %cst_91 {dimension_numbers = #tpu.dot_dimension_numbers<[1], [0], [0], [1], [0, 0, 1, 1], [], []>} : vector<8x64xf32>, vector<64x16xf32>, vector<8x16xf32> -> vector<8x16xf32>
    %c1_92 = arith.constant 1 : index
    %c1_93 = arith.constant 1 : index
    %c0_94 = arith.constant 0 : index
    %c0_95 = arith.constant 0 : index
    %89 = vector.load %arg4[%c1_92, %c1_93, %c0_94, %c0_95] : memref<2x2x1x16xf32, #tpu.memory_space<vmem>>, vector<1x1x1x16xf32>
    %90 = vector.shape_cast %89 : vector<1x1x1x16xf32> to vector<1x16xf32>
    %91 = vector.broadcast %90 : vector<1x16xf32> to vector<8x16xf32>
    %92 = arith.addf %88, %91 : vector<8x16xf32>
    %93 = vector.broadcast %61 : vector<8x1xf32> to vector<8x16xf32>
    %94 = arith.mulf %92, %93 : vector<8x16xf32>
    %cst_96 = arith.constant 0.000000e+00 : f32
    %95 = vector.broadcast %cst_96 : f32 to vector<8x16xf32>
    %96 = arith.maximumf %94, %95 : vector<8x16xf32>
    %c0_97 = arith.constant 0 : index
    %c48_98 = arith.constant 48 : index
    %97 = vector.load %arg8[%c0_97, %c48_98] : memref<8x64xf32, #tpu.memory_space<vmem>>, vector<8x16xf32>
    tpu.vector_store %arg8[%c0_97, %c48_98], %96 {strides = array<i32>} : memref<8x64xf32, #tpu.memory_space<vmem>>, vector<8x16xf32>,
    %c0_99 = arith.constant 0 : index
    %c32_100 = arith.constant 32 : index
    %98 = vector.load %arg8[%c0_99, %c32_100] : memref<8x64xf32, #tpu.memory_space<vmem>>, vector<8x32xf32>
    %99 = arith.addf %98, %4 : vector<8x32xf32>
    %c1_101 = arith.constant 1 : index
    %c0_102 = arith.constant 0 : index
    %c0_103 = arith.constant 0 : index
    %100 = vector.load %arg5[%c1_101, %c0_102, %c0_103] : memref<2x32x128xf32, #tpu.memory_space<vmem>>, vector<1x32x128xf32>
    %101 = vector.shape_cast %100 : vector<1x32x128xf32> to vector<32x128xf32>
    %cst_104 = arith.constant dense<0.000000e+00> : vector<8x128xf32>
    %102 = tpu.matmul %99, %101, %cst_104 {dimension_numbers = #tpu.dot_dimension_numbers<[1], [0], [0], [1], [0, 0, 1, 1], [], []>} : vector<8x32xf32>, vector<32x128xf32>, vector<8x128xf32> -> vector<8x128xf32>
    %103 = arith.addf %54, %102 : vector<8x128xf32>
    %c0_105 = arith.constant 0 : index
    %c0_106 = arith.constant 0 : index
    %104 = vector.load %arg6[%c0_105, %c0_106] : memref<1x128xf32, #tpu.memory_space<vmem>>, vector<1x128xf32>
    %105 = vector.broadcast %104 : vector<1x128xf32> to vector<8x128xf32>
    %106 = arith.addf %103, %105 : vector<8x128xf32>
    %c0_107 = arith.constant 0 : index
    %c0_108 = arith.constant 0 : index
    %c0_109 = arith.constant 0 : index
    %107 = vector.load %arg7[%c0_107, %c0_108, %c0_109] : memref<1x8x128xf32, #tpu.memory_space<vmem>>, vector<1x8x128xf32>
    %108 = vector.shape_cast %107 : vector<1x8x128xf32> to vector<8x128xf32>
    %109 = vector.shape_cast %106 : vector<8x128xf32> to vector<1x8x128xf32>
    tpu.vector_store %arg7[%c0_107, %c0_108, %c0_109], %109 {strides = array<i32>} : memref<1x8x128xf32, #tpu.memory_space<vmem>>, vector<1x8x128xf32>,
    return
  }
  func.func @transform_0(%arg0: i32) -> (i32, i32, i32, i32) {
    %c0_i32 = arith.constant 0 : i32
    %c0_i32_0 = arith.constant 0 : i32
    %c0_i32_1 = arith.constant 0 : i32
    %c0_i32_2 = arith.constant 0 : i32
    return %c0_i32, %arg0, %c0_i32_0, %c0_i32_1 : i32, i32, i32, i32
  }
  func.func @transform_1(%arg0: i32) -> (i32, i32, i32) {
    %c0_i32 = arith.constant 0 : i32
    %c0_i32_0 = arith.constant 0 : i32
    %c0_i32_1 = arith.constant 0 : i32
    return %arg0, %c0_i32, %c0_i32_0 : i32, i32, i32
  }
  func.func @transform_2(%arg0: i32) -> (i32, i32, i32, i32) {
    %c0_i32 = arith.constant 0 : i32
    %c0_i32_0 = arith.constant 0 : i32
    %c0_i32_1 = arith.constant 0 : i32
    %c0_i32_2 = arith.constant 0 : i32
    %c0_i32_3 = arith.constant 0 : i32
    return %c0_i32, %c0_i32_0, %c0_i32_1, %c0_i32_2 : i32, i32, i32, i32
  }
  func.func @transform_3(%arg0: i32) -> (i32, i32, i32, i32) {
    %c0_i32 = arith.constant 0 : i32
    %c0_i32_0 = arith.constant 0 : i32
    %c0_i32_1 = arith.constant 0 : i32
    %c0_i32_2 = arith.constant 0 : i32
    %c0_i32_3 = arith.constant 0 : i32
    return %c0_i32, %c0_i32_0, %c0_i32_1, %c0_i32_2 : i32, i32, i32, i32
  }
  func.func @transform_4(%arg0: i32) -> (i32, i32, i32) {
    %c0_i32 = arith.constant 0 : i32
    %c0_i32_0 = arith.constant 0 : i32
    %c0_i32_1 = arith.constant 0 : i32
    %c0_i32_2 = arith.constant 0 : i32
    return %c0_i32, %c0_i32_0, %c0_i32_1 : i32, i32, i32
  }
  func.func @transform_5(%arg0: i32) -> (i32, i32) {
    %c0_i32 = arith.constant 0 : i32
    %c0_i32_0 = arith.constant 0 : i32
    %c0_i32_1 = arith.constant 0 : i32
    return %c0_i32, %c0_i32_0 : i32, i32
  }
  func.func @transform_6(%arg0: i32) -> (i32, i32, i32) {
    %c0_i32 = arith.constant 0 : i32
    %c0_i32_0 = arith.constant 0 : i32
    %c0_i32_1 = arith.constant 0 : i32
    return %arg0, %c0_i32, %c0_i32_0 : i32, i32, i32
  }
}

</mosaic_0001>

<bundles_post_ra>
// kernel: tpu_custom_call.1
= control target key start
LH: loop header
LB: loop body
LE: loop exit
PB: predicated region body
PF: predicated region fallthrough
CT: control target
= control target key end

     0   :  { %11 = vsyncpa [#allocation6], 0  ;;  %s1992_s0 = inlined_call_operand.vmem [shape: f32[2,2,8,8], index: 0, kind: input, shape index: {}]   ;;  %s1993_s1 = inlined_call_operand.vmem [shape: f32[2,8,32], index: 1, kind: input, shape index: {}]   ;;  %s1994_s2 = inlined_call_operand.vmem [shape: f32[2,2,64,16], index: 2, kind: input, shape index: {}]   ;;  %s1995_s3 = inlined_call_operand.vmem [shape: f32[2,2,1,16], index: 3, kind: input, shape index: {}]   ;;  %s1996_s4 = inlined_call_operand.vmem [shape: f32[2,32,128], index: 4, kind: input, shape index: {}]   ;;  %s1997_s5 = inlined_call_operand.vmem [shape: f32[1,128], index: 5, kind: input, shape index: {}]   ;;  %s1998_s6 = inlined_call_operand.hbm [shape: f32[2,8,128], index: 6, kind: output, shape index: {}]  }
   0x1   :  { %13 = vsyncpa [#allocation6 + $0x1], 0  ;;  %s1638_s21 = smov 0   ;;  %s1640_s22 = smov 0  }
   0x2   :  { %s1642_s23 = smov 0   ;;  %s1644_s24 = smov 0  }
   0x3 LB: > { %s1659_s25 = sadd.s32 4294967295, %s1594_s24   ;;  %s1187_s26 = sadd.s32 4294967294, %s1594_s24   ;;  %s1594_s24 = sphi %s1644_s24, %s2004_s24   ;;  %s1590_s23 = sphi %s1642_s23, %s2003_s23   ;;  %s1586_s22 = sphi %s1640_s22, %s2002_s22   ;;  %s1582_s21 = sphi %s1638_s21, %s2001_s21  }
   0x4   : > { %s1663_s27 = sadd.s32 1, %s1594_s24   ;;  %s26_s28 = sadd.s32 1, %s1590_s23 }
   0x5   : > { %s23_s29 = ssub.s32 %s1594_s24, %s1663_s27  ;;  %p33_p0 = scmp.ne.s32.totalorder %s1590_s23, %s1586_s22 }
   0x6   : > { %p24_p1 = scmp.eq.s32.totalorder %s23_s29, 0  ;;  %p34_p2 = scmp.eq.s32.totalorder %s1594_s24, 0 }
   0x7   : > { %p173_p3 = scmp.eq.s32.totalorder %s1659_s25, 1  ;;  %p178_p4 = scmp.ne.s32.totalorder %s1586_s22, %s1582_s21 }
   0x8   : > { %s1675_s30 = scalar_select %p24_p1, %s1590_s23, %s26_s28  }
   0x9   : > { %p35_p5 = por %p34_p2, %p33_p0  ;;  %p1677_p6 = por %p173_p3, %p33_p0 }
   0xa   : > { %p179_p7 = scmp.eq.s32.totalorder %s1187_s26, 1  ;;  %p1189_p9 = scmp.ge.s32.totalorder %s1594_s24, 2 }
   0xc   : > { %p1681_p8 = por %p179_p7, %p178_p4  ;;  %207 = sbr.rel (%p1189_p9) target bundleno = 26 (0x1a), region = 32 }
  0x13   : > { %210 = sbr.rel (!%p35_p5) target bundleno = 26 (0x1a), region = 36  ;;  %s212_s9 = sand.u32 (%p35_p5), 1, %s1590_s23  }
  0x14   : > { %s1191_s10 = sshll.u32 (%p35_p5), %s1594_s24, 3  ;;  %s1190_s11 = sshll.u32 (%p35_p5), %s212_s9, 4 }
  0x15   : > { %s216_s14 = scalar_lea.vmem (%p35_p5), %s1992_s0, %s1191_s10  ;;  %s214_s15 = scalar_lea.vmem (%p35_p5), [#allocation4], %s1190_s11 }
  0x16   : > { %v246_v0 = vld [vmem:[%s216_s14] sm:$0xff] (%p35_p5)  ;;  %v248_v1 = vld [vmem:[%s216_s14 + $0x10] sm:$0xff] (%p35_p5) }
  0x17   : > { %247 = vst [vmem:[%s214_s15] sm:$0xff] (%p35_p5), %v246_v0  ;;  %249 = vst [vmem:[%s214_s15 + $0x8] sm:$0xff] (%p35_p5), %v248_v1 }
  0x1a PF: > { %p1192_p10 = scmp.ge.s32.totalorder %s1594_s24, 1  ;;  %p261_p11 = scmp.lt.s32.totalorder %s1594_s24, 3 }
  0x1c   : > { %p262_p12 = pnand %p1192_p10, %p261_p11 }
  0x1d   : > { %p301_p13 = scmp.lt.s32.totalorder (!%p262_p12), %s1659_s25, 1  ;;  %s1697_s16 = sand.u32 (!%p262_p12), 1, %s1586_s22   ;;  %v1596_v2 = vmov (!%p262_p12), 0.0   ;;  %vm1597_vm0 = vmmov (!%p262_p12), 0   ;;  %v371_v3 = vld [vmem:[%s1994_s2] sm:$0xff] (!%p262_p12)  ;;  %v372_v4 = vld [vmem:[%s1994_s2 + $0x8] sm:$0xff] (!%p262_p12) }
  0x1e   : > { %265 = sbr.rel (%p262_p12) target bundleno = 2431 (0x97f), region = 78  ;;  %1301 = vmatprep.subr.bf16.mxu0 (!%p262_p12), %v1596_v2  ;;  %1303 = vmatprep.mubr.msk.bf16.mxu0 (!%p262_p12), %vm1597_vm0, %v1596_v2  ;;  %s1193_s17 = sshll.u32 (!%p262_p12), %s1697_s16, 4  ;;  %vm306_vm1 = vcmask (!%p262_p12), 523520   ;;  %v1598_v5 = vmov (!%p262_p12), 0.0|0.0   ;;  %v1424_v6 = vpack.c.bf16 (!%p262_p12), %v372_v4, %v371_v3  ;;  %vm311_vm2 = vcmask (!%p262_p12), 261120   ;;  %v373_v12 = vld [vmem:[%s1994_s2 + $0x10] sm:$0xff] (!%p262_p12) }
  0x1f   : > { %1423 = vmatprep.subr.bf16.mxu1 (!%p262_p12), %v1598_v5  ;;  %307 = vst.msk [vmem:[#allocation2] sm:$0xff] (!%p262_p12), %vm306_vm1, %v1596_v2  ;;  %308 = vst.msk [vmem:[#allocation3] sm:$0xff] (!%p262_p12), %vm306_vm1, %v1596_v2  ;;  %1323 = vmatprep.mubr.msk.f32.mxu1 (!%p262_p12), %vm1597_vm0, %v1596_v2  ;;  %vm324_vm3 = vcmask (!%p262_p12), 1043456   ;;  %s1721_s12 = scalar_lea.vmem (!%p262_p12), [#allocation4], %s1193_s17  ;;  %vm314_vm4 = vcmask (!%p262_p12), 64512   ;;  %v374_v13 = vld [vmem:[%s1994_s2 + $0x18] sm:$0xff] (!%p262_p12) }
  0x20   : > { %1425 = vmatpush3.bf16.msra.mxu1 (!%p262_p12), %v1424_v6  ;;  %v313_v8 = vld [vmem:[%s1721_s12] sm:$0xff] (!%p262_p12)  ;;  %v1427_v14 = vpack.c.bf16 (!%p262_p12), %v374_v13, %v373_v12  ;;  %v376_v16 = vld [vmem:[%s1994_s2 + $0x28] sm:$0xff] (!%p262_p12)  ;;  %v378_v19 = vld [vmem:[%s1994_s2 + $0x38] sm:$0xff] (!%p262_p12)  ;;  %vm387_vm5 = vcmask (!%p262_p12), 523264   ;;  %s1599_s13 = smov (!%p262_p12), 32   ;;  %vm467_vm6 = vcmask (!%p262_p12), 392448  }
  0x21   : > { %1426 = vmatprep.subr.bf16.mxu1 (!%p262_p12), %v1598_v5  ;;  %v320_v11 = vpack.c.bf16 (!%p262_p12), %v313_v8, %v313_v8  ;;  %v375_v15 = vld [vmem:[%s1994_s2 + $0x20] sm:$0xff] (!%p262_p12)  ;;  %v377_v18 = vld [vmem:[%s1994_s2 + $0x30] sm:$0xff] (!%p262_p12)  ;;  %v315_v21 = vsel (!%p262_p12), %vm314_vm4, %v313_v8, 0.0  ;;  %v1757_v27 = vld [vmem:[%s1721_s12 + $0x8] sm:$0xff] (!%p262_p12)  ;;  %vm617_vm7 = vcmask (!%p262_p12), 523648   ;;  %s1097_s17 = scalar_lea.sflag (!%p262_p12), [#allocation6], %s1697_s16 }
  0x22   : > { %v1430_v17 = vpack.c.bf16 (!%p262_p12), %v376_v16, %v375_v15  ;;  %v1433_v20 = vpack.c.bf16 (!%p262_p12), %v378_v19, %v377_v18  ;;  %316 = vadd.xlane.f32.xlu0 (!%p262_p12), %v315_v21  ;;  %v1761_v30 = vpack.c.bf16 (!%p262_p12), %v1757_v27, %v1757_v27  ;;  %v1197_v33 = vld [vmem:[%s1995_s3] ss:$0 sm:$0xff] (!%p262_p12)  ;;  %v1201_v43 = vld [vmem:[%s1994_s2 + $0x48] sm:$0xff] (!%p262_p12)  ;;  %v1202_v44 = vld [vmem:[%s1994_s2 + $0x50] sm:$0xff] (!%p262_p12) }
  0x23   : > { %v1200_v42 = vld [vmem:[%s1994_s2 + $0x40] sm:$0xff] (!%p262_p12)  ;;  %v1203_v46 = vld [vmem:[%s1994_s2 + $0x58] sm:$0xff] (!%p262_p12)  ;;  %v1205_v50 = vld [vmem:[%s1994_s2 + $0x68] sm:$0xff] (!%p262_p12) }
  0x24   : > { %1428 = vmatpush3.bf16.msra.mxu1 (!%p262_p12), %v1427_v14  ;;  %v1436_v45 = vpack.c.bf16 (!%p262_p12), %v1201_v43, %v1200_v42  ;;  %v1439_v47 = vpack.c.bf16 (!%p262_p12), %v1203_v46, %v1202_v44  ;;  %v1204_v49 = vld [vmem:[%s1994_s2 + $0x60] sm:$0xff] (!%p262_p12)  ;;  %v1206_v51 = vld [vmem:[%s1994_s2 + $0x70] sm:$0xff] (!%p262_p12)  ;;  %v1207_v53 = vld [vmem:[%s1994_s2 + $0x78] sm:$0xff] (!%p262_p12) }
  0x25   : > { %s302_s28 = scalar_select %p301_p13, %s1659_s25, 1  ;;  %1429 = vmatprep.subr.bf16.mxu1 %v1598_v5  ;;  %v1442_v52 = vpack.c.bf16 %v1205_v50, %v1204_v49  ;;  %v1445_v54 = vpack.c.bf16 %v1207_v53, %v1206_v51  ;;  %v1213_v63 = vld [vmem:[%s1994_s2 + $0x80] sm:$0xff]  ;;  %v1214_v0 = vld [vmem:[%s1994_s2 + $0x88] sm:$0xff]  ;;  %v1215_v3 = vld [vmem:[%s1994_s2 + $0x90] sm:$0xff] }
  0x26   : > { %v1448_v4 = vpack.c.bf16 %v1214_v0, %v1213_v63  ;;  %v1216_v6 = vld [vmem:[%s1994_s2 + $0x98] sm:$0xff]  ;;  %v1217_v12 = vld [vmem:[%s1994_s2 + $0xa0] sm:$0xff]  ;;  %v1218_v13 = vld [vmem:[%s1994_s2 + $0xa8] sm:$0xff] }
  0x27   : > { %s1195_s29 = sshll.u32 %s302_s28, 3  ;;  %v1219_v14 = vld [vmem:[%s1994_s2 + $0xb0] sm:$0xff]  ;;  %v1454_v15 = vpack.c.bf16 %v1218_v13, %v1217_v12  ;;  %v1220_v16 = vld [vmem:[%s1994_s2 + $0xb8] sm:$0xff]  ;;  %v1209_v18 = vld [vmem:[%s1995_s3 + $0x1] ss:$0 sm:$0xff]  ;;  %s1194_s28 = sshll.u32 %s1697_s16, 3 }
  0x28   : > { %s304_s11 = scalar_lea.vmem %s1993_s1, %s1195_s29  ;;  %1431 = vmatpush3.bf16.msra.mxu1 %v1430_v17  ;;  %v1457_v17 = vpack.c.bf16 %v1220_v16, %v1219_v14  ;;  %s1600_s29 = smov 48   ;;  %v1226_v42 = vld [vmem:[%s1994_s2 + $0xc8] sm:$0xff]  ;;  %v1227_v43 = vld [vmem:[%s1994_s2 + $0xd0] sm:$0xff]  ;;  %v1232_v51 = vld [vmem:[%s1994_s2 + $0xf8] sm:$0xff] }
  0x29   : > { %v1719_v7 = vld [vmem:[%s304_s11] sm:$0xff]  ;;  %1432 = vmatprep.subr.bf16.mxu1 %v1598_v5  ;;  %v1231_v49 = vld [vmem:[%s1994_s2 + $0xf0] sm:$0xff]  ;;  %s1244_s11 = sshll.u32 %s1659_s25, 7  ;;  %s300_s12 = scalar_lea.vmem [#allocation5], %s1194_s28 }
  0x2a   : > { %v310_v9 = vpack.c.bf16 %v1719_v7, %v1719_v7  ;;  %312 = vst.msk [vmem:[#allocation2] sm:$0xff] %vm311_vm2, %v1719_v7  ;;  %v625_v16 = vld [vmem:[%s1996_s4] sm:$0xff]  ;;  %s1948_s15 = scalar_lea.hbm %s1998_s6, %s1244_s11  ;;  %s1602_s25 = smov [#allocation5]  }
  0x2b   : > { %s1536_s19 = sshll.u32 %s1602_s25, 4  ;;  %s1537_s19 = int_to_ptr.vmem [resolvable:$false] %s1536_s19 }
  0x2c   : > { %v326_v10 = vsel %vm324_vm3, %v310_v9, 0  ;;  %1434 = vmatpush3.bf16.msra.mxu1 %v1433_v20  ;;  %s1538_s20 = scalar_lea.vmem %s1537_s19, 256 }
  0x2d   : > { %1302 = vmatpush3.bf16.msra.mxu0 %v326_v10  ;;  %1351 = vmatprep.subr.bf16.mxu1 %v1596_v2 }
  0x2e   : > { %1326 = vmatprep.subr.bf16.mxu0 %v1596_v2 }
  0x30   : > { %1304 = vmatmul.mubr.msk.bf16.vlgmr.msra.gmra.mrb[0].mxu0 %vm314_vm4, %v320_v11 }
  0x31   : > { %1328 = vmatprep.mubr.msk.bf16.mxu0 %vm1597_vm0, %v1596_v2  ;;  %v369_v26 = vld [vmem:[#allocation2] sm:$0xff] }
  0xaf   : > { %v317_v31 = vpop.xlane.xlu0 %316 }
  0xb0   : > { %v318_v32 = vadd.f32 1.0, %v317_v31 }
  0xb2   : > { %1528 = vrcp.f32 %v318_v32 }
  0xbc   : > { %v1774_v34 = vpop.eup %1528 }
 0x103   : > { %v362_v22 = vpop.f32.mrb[0].mxu0 }
 0x104   : > { %368 = vst.msk [vmem:[#allocation3] sm:$0xff] %vm311_vm2, %v362_v22  ;;  %v1305_v23 = vpop.f32.mrb[1].mxu0 }
 0x105   : > { %v365_v24 = vpop.f32.mrb[2].mxu0 }
 0x106   : > { %v1306_v25 = vpop.f32.mrb[3].mxu0  ;;  %v631_v24 = vsel %vm314_vm4, %v1757_v27, 0.0  ;;  %v1222_v27 = vld [vmem:[%s1995_s3 + $0x2] ss:$0 sm:$0xff] }
 0x10b   : > { %v370_v28 = vld [vmem:[#allocation3] sm:$0xff] }
 0x10c   : > { %v379_v29 = vadd.f32 %v370_v28, %v369_v26 }
 0x10e   : > { %1324 = vmatmul.mubr.msk.f32.vlgmr.msra.gmra.mrb[0].mxu1 %vm387_vm5, %v379_v29 }
 0x10f   : > { %1352 = vmatpush3.bf16.msra.mxu1 %v326_v10  ;;  %1353 = vmatprep.mubr.msk.bf16.mxu1 %vm1597_vm0, %v1596_v2  ;;  %v1451_v10 = vpack.c.bf16 %v1216_v6, %v1215_v3  ;;  %v1236_v3 = vld [vmem:[%s1996_s4 + $0x20] sm:$0xff] }
 0x110   : > { %1447 = vmatprep.subr.bf16.mxu1 %v1598_v5 }
 0x112   : > { %1354 = vmatmul.mubr.msk.bf16.vlgmr.msra.gmra.mrb[4].mxu1 %vm314_vm4, %v1761_v30 }
 0x113   : > { %1373 = vmatprep.mubr.msk.f32.mxu1 %vm1597_vm0, %v1596_v2  ;;  %1449 = vmatpush3.bf16.msra.mxu1 %v1448_v4  ;;  %v1237_v4 = vld [vmem:[%s1996_s4 + $0x28] sm:$0xff] }
 0x114   : > { %1450 = vmatprep.subr.bf16.mxu1 %v1598_v5 }
 0x117   : > { %1452 = vmatpush3.bf16.msra.mxu1 %v1451_v10  ;;  %v1239_v10 = vld [vmem:[%s1996_s4 + $0x38] sm:$0xff] }
 0x118   : > { %1453 = vmatprep.subr.bf16.mxu1 %v1598_v5 }
 0x11b   : > { %1455 = vmatpush3.bf16.msra.mxu1 %v1454_v15 }
 0x11c   : > { %1456 = vmatprep.subr.bf16.mxu1 %v1598_v5 }
 0x11f   : > { %1458 = vmatpush3.bf16.msra.mxu1 %v1457_v17  ;;  %v626_v17 = vld [vmem:[%s1996_s4 + $0x8] sm:$0xff] }
 0x120   : > { %1471 = vmatprep.subr.bf16.mxu1 %v1598_v5 }
 0x1e1   : > { %v457_v35 = vpop.f32.mrb[0].mxu1 }
 0x1e2   : > { %v458_v36 = vadd.f32 %v1197_v33, %v457_v35  ;;  %v1325_v37 = vpop.f32.mrb[1].mxu1 }
 0x1e4   : > { %v461_v38 = vmul.f32 %v1774_v34, %v458_v36 }
 0x1e5   : > { %v674_v1 = vpop.f32.mrb[4].mxu1 }
 0x1e6   : > { %v462_v39 = vmax.f32 %v461_v38, 0.0  ;;  %v1355_v8 = vpop.f32.mrb[5].mxu1 }
 0x1e7   : > { %v677_v9 = vpop.f32.mrb[6].mxu1  ;;  %v1472_v8 = vpack.c.bf16 %v1237_v4, %v1236_v3 }
 0x1e8   : > { %v469_v40 = vpack.c.bf16 %v462_v39, %v462_v39  ;;  %464 = vrot.lane.b32.xlu0 %v462_v39, %s1599_s13  ;;  %v1238_v9 = vld [vmem:[%s1996_s4 + $0x30] sm:$0xff] }
 0x1ea   : > { %v471_v41 = vsel %vm324_vm3, %v469_v40, 0 }
 0x1eb   : > { %1327 = vmatpush3.bf16.msra.mxu0 %v471_v41  ;;  %v1225_v41 = vld [vmem:[%s1994_s2 + $0xc0] sm:$0xff] }
 0x1ec   : > { %1435 = vmatprep.subr.bf16.mxu0 %v1598_v5  ;;  %v1460_v44 = vpack.c.bf16 %v1226_v42, %v1225_v41 }
 0x1ee   : > { %1329 = vmatmul.mubr.msk.bf16.vlgmr.msra.gmra.mrb[4].mxu0 %vm314_vm4, %v320_v11  ;;  %v1356_v11 = vpop.f32.mrb[7].mxu1 }
 0x1ef   : > { %1348 = vmatprep.mubr.msk.f32.mxu0 %vm1597_vm0, %v1596_v2  ;;  %1437 = vmatpush3.bf16.msra.mxu0 %v1436_v45  ;;  %v1475_v11 = vpack.c.bf16 %v1239_v10, %v1238_v9 }
 0x1f0   : > { %1438 = vmatprep.subr.bf16.mxu0 %v1598_v5 }
 0x1f3   : > { %1440 = vmatpush3.bf16.msra.mxu0 %v1439_v47  ;;  %v1229_v47 = vld [vmem:[%s1994_s2 + $0xe0] sm:$0xff] }
 0x1f4   : > { %1441 = vmatprep.subr.bf16.mxu0 %v1598_v5 }
 0x1f7   : > { %1443 = vmatpush3.bf16.msra.mxu0 %v1442_v52  ;;  %v1469_v52 = vpack.c.bf16 %v1232_v51, %v1231_v49 }
 0x1f8   : > { %1444 = vmatprep.subr.bf16.mxu0 %v1598_v5 }
 0x1fb   : > { %1446 = vmatpush3.bf16.msra.mxu0 %v1445_v54 }
 0x1fc   : > { %1376 = vmatprep.subr.bf16.mxu0 %v1596_v2 }
 0x25a   : > { %v465_v48 = vpop.permute.xlu0 %464 }
 0x25b   : > { %468 = vst.msk [vmem:[#allocation2] sm:$0xff] %vm467_vm6, %v465_v48  ;;  %v1230_v48 = vld [vmem:[%s1994_s2 + $0xe8] sm:$0xff] }
 0x25c   : > { %v1466_v50 = vpack.c.bf16 %v1230_v48, %v1229_v47 }
 0x262   : > { %v518_v60 = vld [vmem:[#allocation2] sm:$0xff] }
 0x2c1   : > { %v507_v55 = vpop.f32.mrb[4].mxu0 }
 0x2c2   : > { %514 = vrot.lane.b32.xlu1 %v507_v55, %s1599_s13  ;;  %v1330_v56 = vpop.f32.mrb[5].mxu0 }
 0x2c3   : > { %v510_v57 = vpop.f32.mrb[6].mxu0 }
 0x2c4   : > { %v1331_v58 = vpop.f32.mrb[7].mxu0 }
 0x334   : > { %v515_v59 = vpop.permute.xlu1 %514 }
 0x335   : > { %517 = vst.msk [vmem:[#allocation3] sm:$0xff] %vm467_vm6, %v515_v59 }
 0x33c   : > { %v519_v61 = vld [vmem:[#allocation3] sm:$0xff] }
 0x33d   : > { %v529_v62 = vadd.f32 %v519_v61, %v518_v60  ;;  %680 = vst.msk [vmem:[#allocation3] sm:$0xff] %vm311_vm2, %v674_v1  ;;  %v1234_v61 = vld [vmem:[%s1995_s3 + $0x3] ss:$0 sm:$0xff] }
 0x33f   : > { %1349 = vmatmul.mubr.msk.f32.vlgmr.msra.gmra.mrb[8].mxu0 %vm387_vm5, %v529_v62 }
 0x340   : > { %1378 = vmatprep.mubr.msk.bf16.mxu0 %vm1597_vm0, %v1596_v2 }
 0x344   : > { %v682_v26 = vld [vmem:[#allocation3] sm:$0xff] }
 0x412   : > { %v607_v19 = vpop.f32.mrb[8].mxu0 }
 0x413   : > { %v608_v20 = vadd.f32 %v1209_v18, %v607_v19  ;;  %v1350_v21 = vpop.f32.mrb[9].mxu0  ;;  %v1478_v18 = vpack.c.bf16 %v626_v17, %v625_v16  ;;  %v627_v19 = vld [vmem:[%s1996_s4 + $0x10] sm:$0xff] }
 0x415   : > { %v611_v22 = vmul.f32 %v1774_v34, %v608_v20  ;;  %v628_v20 = vld [vmem:[%s1996_s4 + $0x18] sm:$0xff] }
 0x417   : > { %v612_v23 = vmax.f32 %v611_v22, 0.0  ;;  %v1481_v22 = vpack.c.bf16 %v628_v20, %v627_v19 }
 0x419   : > { %614 = vrot.lane.b32.xlu1 %v612_v23, %s1600_s29 }
 0x43d   : > { %632 = vadd.xlane.f32.xlu1 %v631_v24 }
 0x48b   : > { %v615_v25 = vpop.permute.xlu1 %614 }
 0x48c   : > { %618 = vst.msk [vmem:[#allocation2] sm:$0xff] %vm617_vm7, %v615_v25 }
 0x493   : > { %v1854_v28 = vld [vmem:[#allocation2] sm:$0xff] }
 0x494   : > { %v692_v29 = vadd.f32 %v682_v26, %v1854_v28 }
 0x496   : > { %1374 = vmatmul.mubr.msk.f32.vlgmr.msra.gmra.mrb[2].mxu1 %vm387_vm5, %v692_v29 }
 0x497   : > { %1409 = vmatprep.mubr.msk.f32.mxu1 %vm1597_vm0, %v1596_v2  ;;  %1473 = vmatpush3.bf16.msra.mxu1 %v1472_v8 }
 0x498   : > { %1474 = vmatprep.subr.bf16.mxu1 %v1598_v5 }
 0x49b   : > { %1476 = vmatpush3.bf16.msra.mxu1 %v1475_v11 }
 0x49c   : > { %1477 = vmatprep.subr.bf16.mxu1 %v1598_v5 }
 0x4ca   : > { %v633_v31 = vpop.xlane.xlu1 %632 }
 0x4cb   : > { %v634_v32 = vadd.f32 1.0, %v633_v31 }
 0x4cd   : > { %1530 = vrcp.f32 %v634_v32 }
 0x4d7   : > { %v1531_v33 = vpop.eup %1530 }
 0x569   : > { %v770_v34 = vpop.f32.mrb[2].mxu1 }
 0x56a   : > { %v771_v35 = vadd.f32 %v1222_v27, %v770_v34  ;;  %v1375_v36 = vpop.f32.mrb[3].mxu1 }
 0x56c   : > { %v774_v37 = vmul.f32 %v1531_v33, %v771_v35 }
 0x56e   : > { %v775_v38 = vmax.f32 %v774_v37, 0.0 }
 0x570   : > { %v781_v39 = vpack.c.bf16 %v775_v38, %v775_v38  ;;  %777 = vrot.lane.b32.xlu0 %v775_v38, %s1599_s13 }
 0x572   : > { %v783_v40 = vsel %vm324_vm3, %v781_v39, 0 }
 0x573   : > { %1377 = vmatpush3.bf16.msra.mxu0 %v783_v40 }
 0x574   : > { %1459 = vmatprep.subr.bf16.mxu0 %v1598_v5 }
 0x576   : > { %1379 = vmatmul.mubr.msk.bf16.vlgmr.msra.gmra.mrb[12].mxu0 %vm314_vm4, %v1761_v30  ;;  %v1228_v30 = vld [vmem:[%s1994_s2 + $0xd8] sm:$0xff] }
 0x577   : > { %1398 = vmatprep.mubr.msk.f32.mxu0 %vm1597_vm0, %v1596_v2  ;;  %1461 = vmatpush3.bf16.msra.mxu0 %v1460_v44  ;;  %v1463_v45 = vpack.c.bf16 %v1228_v30, %v1227_v43 }
 0x578   : > { %1462 = vmatprep.subr.bf16.mxu0 %v1598_v5 }
 0x57b   : > { %1464 = vmatpush3.bf16.msra.mxu0 %v1463_v45 }
 0x57c   : > { %1465 = vmatprep.subr.bf16.mxu0 %v1598_v5 }
 0x57f   : > { %1467 = vmatpush3.bf16.msra.mxu0 %v1466_v50 }
 0x580   : > { %1468 = vmatprep.subr.bf16.mxu0 %v1598_v5 }
 0x583   : > { %1470 = vmatpush3.bf16.msra.mxu0 %v1469_v52 }
 0x5e2   : > { %v778_v46 = vpop.permute.xlu0 %777 }
 0x5e3   : > { %780 = vst.msk [vmem:[#allocation2] sm:$0xff] %vm467_vm6, %v778_v46 }
 0x5ea   : > { %v830_v58 = vld [vmem:[#allocation2] sm:$0xff] }
 0x649   : > { %v819_v53 = vpop.f32.mrb[12].mxu0 }
 0x64a   : > { %826 = vrot.lane.b32.xlu0 %v819_v53, %s1599_s13  ;;  %v1380_v54 = vpop.f32.mrb[13].mxu0 }
 0x64b   : > { %v822_v55 = vpop.f32.mrb[14].mxu0 }
 0x64c   : > { %v1381_v56 = vpop.f32.mrb[15].mxu0 }
 0x6bc   : > { %v827_v57 = vpop.permute.xlu0 %826 }
 0x6bd   : > { %829 = vst.msk [vmem:[#allocation3] sm:$0xff] %vm467_vm6, %v827_v57 }
 0x6c4   : > { %v831_v59 = vld [vmem:[#allocation3] sm:$0xff] }
 0x6c5   : > { %v841_v60 = vadd.f32 %v831_v59, %v830_v58 }
 0x6c7   : > { %1399 = vmatmul.mubr.msk.f32.vlgmr.msra.gmra.mrb[10].mxu0 %vm387_vm5, %v841_v60 }
 0x79a   : > { %v919_v62 = vpop.f32.mrb[10].mxu0 }
 0x79b   : > { %v920_v63 = vadd.f32 %v1234_v61, %v919_v62  ;;  %v1400_v0 = vpop.f32.mrb[11].mxu0 }
 0x79d   : > { %v923_v1 = vmul.f32 %v1531_v33, %v920_v63 }
 0x79f   : > { %v924_v6 = vmax.f32 %v923_v1, 0.0 }
 0x7a1   : > { %926 = vrot.lane.b32.xlu0 %v924_v6, %s1600_s29  ;;  %s1601_s29 = smov 96  }
 0x7a5   : > { %621 = vrot.lane.b32.xlu0 %v1719_v7, %s1599_s13 }
 0x813   : > { %v927_v12 = vpop.permute.xlu0 %926 }
 0x814   : > { %929 = vst.msk [vmem:[#allocation2] sm:$0xff] %vm617_vm7, %v927_v12 }
 0x817   : > { %v622_v13 = vpop.permute.xlu0 %621 }
 0x818   : > { %v624_v14 = vadd.f32 %v1854_v28, %v622_v13  ;;  %v1242_v28 = vld [vmem:[%s1997_s5] ss:$0 sm:$0xff] }
 0x81a   : > { %1013 = vrot.lane.b32.xlu1 %v624_v14, %s1601_s29 }
 0x81b   : > { %v930_v7 = vld [vmem:[#allocation2] sm:$0xff] }
 0x81c   : > { %v931_v15 = vadd.f32 %v930_v7, %v622_v13 }
 0x81e   : > { %938 = vrot.lane.b32.xlu0 %v931_v15, %s1601_s29  ;;  %s1110_s29 = sshll.u32 %s300_s12, 4  ;;  %s1950_s29 = int_to_ptr.vmem [resolvable:$true] %s1110_s29 }
 0x81f   : > { %s1532_s18 = scalar_lea.vmem %s1950_s29, 128  ;;  %p1539_p3 = scmp.lt.s32.totalorder %s1950_s29, %s1537_s19 }
 0x820   : > { %p1533_p0 = scmp.ne.s32.totalorder %s1950_s29, %s1532_s18  ;;  %p1540_p4 = scmp.lt.s32.totalorder %s1538_s20, %s1532_s18 }
 0x822   : > { %p1534_p1 = pnand %p1533_p0, %p1677_p6  ;;  %p1541_p5 = por %p1540_p4, %p1539_p3 }
 0x824   : > { %p1535_p2 = pneg %p1534_p1 }
 0x826   : > { %p1542_p7 = pnand %p1541_p5, %p1535_p2 }
 0x88c   : > { %v1014_v23 = vpop.permute.xlu1 %1013 }
 0x890   : > { %v939_v21 = vpop.permute.xlu0 %938 }
 0x891   : > { %1410 = vmatmul.mubr.msk.f32.vlgmr.msra.gmra.mrb[8].mxu1 %vm311_vm2, %v939_v21 }
 0x892   : > { %1479 = vmatpush3.bf16.msra.mxu1 %v1478_v18  ;;  %1420 = vmatprep.mubr.msk.f32.mxu1 %vm1597_vm0, %v1596_v2 }
 0x893   : > { %1480 = vmatprep.subr.bf16.mxu1 %v1598_v5 }
 0x896   : > { %1482 = vmatpush3.bf16.msra.mxu1 %v1481_v22 }
 0x899   : > { %1421 = vmatmul.mubr.msk.f32.vlgmr.msra.gmra.mrb[10].mxu1 %vm311_vm2, %v1014_v23 }
 0x964   : > { %v1008_v24 = vpop.f32.mrb[8].mxu1 }
 0x965   : > { %v1411_v25 = vpop.f32.mrb[9].mxu1 }
 0x96c   : > { %v1083_v26 = vpop.f32.mrb[10].mxu1 }
 0x96d   : > { %v1084_v2 = vadd.f32 %v1083_v26, %v1008_v24  ;;  %v1422_v29 = vpop.f32.mrb[11].mxu1 }
 0x96f   : > { %v1094_v5 = vadd.f32 %v1242_v28, %v1084_v2 }
 0x971   : > { %1095 = vst [vmem:[%s300_s12] sm:$0xff] %v1094_v5 }
 0x972   : > { %1545 = shalt.err (!%p1542_p7)
}
 0x973   : > { %s1546_s16 = scalar_lea.hbm %s1948_s15, 128  ;;  %s1550_s9 = scalar_lea.hbm %s1998_s6, 256 }
 0x974   : > { %p1547_p10 = scmp.ne.s32.totalorder %s1948_s15, %s1546_s16  ;;  %p1551_p13 = scmp.lt.u32.totalorder %s1948_s15, %s1998_s6 }
 0x975   : > { %p1552_p0 = scmp.lt.u32.totalorder %s1550_s9, %s1546_s16  ;;  %p1554_p2 = scmp.lt.u32.totalorder %s1546_s16, %s1948_s15 }
 0x976   : > { %p1548_p11 = pnand %p1547_p10, %p1677_p6 }
 0x977   : > { %p1553_p1 = por %p1552_p0, %p1551_p13 }
 0x978   : > { %p1549_p12 = pneg %p1548_p11 }
 0x979   : > { %p1555_p3 = por %p1554_p2, %p1553_p1 }
 0x97b   : > { %p1556_p4 = pnand %p1555_p3, %p1549_p12 }
 0x97d   : > { %1559 = shalt.err (!%p1556_p4)
}
 0x97e   : > { %1483 = dma.vmem_to_hbm [thread:$0]  (%p1677_p6), %s1950_s29, 128, %s1948_s15, %s1097_s17  }
 0x97f PF: > { %s1122_s12 = sand.u32 1, %s1582_s21   ;;  %p1486_p5 = pnand %p1189_p9, %p1681_p8 }
 0x980   : > { %s1123_s13 = scalar_lea.sflag [#allocation6], %s1122_s12 }
 0x981   : > { %1577 = dma.done.wait (!%p1486_p5), %s1123_s13, 128  }
 0x982   : > { %1579 = vsyncadd (!%p1486_p5), %s1123_s13, 4294967168  ;;  %p16_p7 = scmp.ge.s32.totalorder %s1663_s27, 4   ;;  %s2001_s21 = smov %s1586_s22 }
 0x983   : > { %s2002_s22 = smov %s1590_s23  ;;  %s2003_s23 = smov %s1675_s30 }
 0x984   : > { %s2004_s24 = smov %s1663_s27  ;;  %18 = sbr.rel (!%p16_p7) target bundleno = 3 (0x3), region = 133 }
 0x98b   :  { %1128 = vsyncpa [#allocation6], 1 }
 0x98c   :  { %1130 = vsyncpa [#allocation6 + $0x1], 1 }

</bundles_post_ra>
